<compile_context>
chip_gen: v5e
topology: v5e:2x2
jax: 0.10.0
libtpu: 0.0.40
codegen_flags: <defaults>
</compile_context>

<pallas_src>
import functools

import jax
import jax.numpy as jnp
from jax.experimental import pallas as pl
from jax.experimental.pallas import tpu as pltpu

K = 13               # kernel size of the first conv
PAD = (K - 1) // 2   # 6
LANES = 128


def _round_up(x, m):
    return ((x + m - 1) // m) * m


def _matchbox_kernel(cols_ref, w_ref, b_ref, o_ref):
    """Fused (conv k=13 + 1x1 conv + BN + ReLU): one MXU matmul per row tile.

    cols_ref : (row_tile, KC_pad) bf16  im2col slab (zero-padded contraction)
    w_ref    : (KC_pad, C_pad)    bf16  conv1 weights with conv2 + BN folded in
    b_ref    : (1, C_pad)         f32   folded bias (conv2 bias*scale + shift)
    o_ref    : (row_tile, C_pad)  bf16  lane-dense output (extra channels zero)
    """
    y = jnp.dot(cols_ref[...], w_ref[...], preferred_element_type=jnp.float32)
    y = y + b_ref[...]                    # folded conv2-bias + BatchNorm shift
    o_ref[...] = jnp.maximum(y, 0.0).astype(o_ref.dtype)  # ReLU; Dropout(0)=id


def fold_matchbox_params(w1, w2, b2, gamma, beta, run_mean, run_var, eps=1e-5):
    """Fold conv2 (1x1 + bias) and BatchNorm into conv1 (exact, eval mode).

    Precompute ONCE for inference and reuse across forward calls.
    Returns:
      w_fold : (KC_pad, C_pad) bf16, tap-major rows (t*C_in + c), zero-padded
      b_fold : (1, C_pad)      f32
    """
    C_out, C_in, _ = w1.shape
    KC = K * C_in
    KC_pad = _round_up(KC, LANES)
    C_pad = _round_up(C_out, LANES)

    scale = gamma / jnp.sqrt(run_var + eps)                        # (C_out,)
    shift = beta - run_mean * scale                                # (C_out,)
    w2_s = jnp.transpose(w2[:, :, 0], (1, 0)) * scale[None, :]     # (in,out)*scale
    w1_t = jnp.transpose(w1, (2, 1, 0)).reshape(KC, C_out)         # tap-major
    w_fold = jnp.dot(w1_t, w2_s, precision=jax.lax.Precision.HIGHEST)
    b_fold = b2 * scale + shift                                    # (C_out,)
    # Zero-pad: contraction 104 -> 128 and channels -> multiple of 128 lanes.
    # Padded output channels stay exactly 0 after ReLU because both the padded
    # weight columns and the padded bias entries are zero.
    w_fold = jnp.pad(w_fold, ((0, KC_pad - KC), (0, C_pad - C_out)))
    b_fold = jnp.pad(b_fold, (0, C_pad - C_out)).reshape(1, C_pad)
    return w_fold.astype(jnp.bfloat16), b_fold.astype(jnp.float32)


@functools.partial(jax.jit, static_argnames=("c_out",))
def matchbox_apply(x_ncl, w_fold, b_fold, *, c_out):
    """x_ncl: (N, C_in, L) f32 -> (N, c_out, L) f32 using folded params."""
    N, C_in, L = x_ncl.shape
    KC_pad, C_pad = w_fold.shape
    KC = K * C_in
    rows = N * L

    # ---- im2col in the wrapper (fused XLA slices/stack), already bf16 -------
    x_nlc = jnp.transpose(x_ncl, (0, 2, 1)).astype(jnp.bfloat16)   # (N, L, C_in)
    x_pad = jnp.pad(x_nlc, ((0, 0), (PAD, PAD), (0, 0)))           # (N, Lp, C_in)
    taps = jnp.stack([x_pad[:, t:t + L, :] for t in range(K)], axis=2)
    cols = taps.reshape(rows, KC)                                  # tap-major cols
    cols = jnp.pad(cols, ((0, 0), (0, KC_pad - KC)))               # 104 -> 128

    # ---- row-tile grid: >= 2 "parallel" tiles so both v7x TCs get work ------
    row_tile = rows
    if rows % 16 == 0:
        row_tile = rows // 2            # split -> each tile a sublane multiple
    while row_tile > 256 and row_tile % 16 == 0:
        row_tile //= 2                  # keep tiles MXU-sized on scale-up
    num_tiles = rows // row_tile

    out_flat = pl.pallas_call(
        _matchbox_kernel,
        out_shape=jax.ShapeDtypeStruct((rows, C_pad), jnp.bfloat16),
        grid_spec=pltpu.PrefetchScalarGridSpec(
            num_scalar_prefetch=0,
            grid=(num_tiles,),
            in_specs=[
                pl.BlockSpec((row_tile, KC_pad), lambda i: (i, 0)),
                pl.BlockSpec((KC_pad, C_pad), lambda i: (0, 0)),
                pl.BlockSpec((1, C_pad), lambda i: (0, 0)),
            ],
            out_specs=pl.BlockSpec((row_tile, C_pad), lambda i: (i, 0)),
        ),
        compiler_params=pltpu.CompilerParams(
            dimension_semantics=("parallel",),
            vmem_limit_bytes=32 * 1024 * 1024),
    )(cols, w_fold, b_fold)

    # Slice off padded channels, upcast, restore NCL (fused XLA epilogue).
    out = out_flat.reshape(N, L, C_pad)[:, :, :c_out].astype(jnp.float32)
    return jnp.transpose(out, (0, 2, 1))                           # (N, C_out, L)


def matchbox_block(x_ncl, w1, w2, b2, gamma, beta, run_mean, run_var, eps=1e-5):
    """Convenience one-shot wrapper (fold + apply). Prefer precomputing the fold."""
    w_fold, b_fold = fold_matchbox_params(w1, w2, b2, gamma, beta,
                                          run_mean, run_var, eps)
    return matchbox_apply(x_ncl, w_fold, b_fold, c_out=w1.shape[0])


def _reference(x_ncl, w1, w2, b2, gamma, beta, run_mean, run_var, eps=1e-5):
    """Pure-JAX f32 reference matching PyTorch semantics (NCL layout)."""
    y = jax.lax.conv_general_dilated(
        x_ncl, w1, window_strides=(1,), padding=[(PAD, PAD)],
        dimension_numbers=('NCH', 'OIH', 'NCH'),
        precision=jax.lax.Precision.HIGHEST)
    y = jax.lax.conv_general_dilated(
        y, w2, window_strides=(1,), padding=[(0, 0)],
        dimension_numbers=('NCH', 'OIH', 'NCH'),
        precision=jax.lax.Precision.HIGHEST) + b2[None, :, None]
    y = (y - run_mean[None, :, None]) / jnp.sqrt(run_var[None, :, None] + eps)
    y = y * gamma[None, :, None] + beta[None, :, None]
    return jnp.maximum(y, 0.0)


if __name__ == "__main__":
    N, C_in, C_out, L = 2, 8, 16, 64

    key = jax.random.PRNGKey(0)
    k_x, k_w1, k_w2, k_b2, k_g, k_b, k_m, k_v = jax.random.split(key, 8)

    x = jax.random.normal(k_x, (N, C_in, L), jnp.float32)
    # Deterministic parameter init (shapes from the nn.Module __init__)
    w1 = jax.random.normal(k_w1, (C_out, C_in, K), jnp.float32) * 0.1   # conv1 weight
    w2 = jax.random.normal(k_w2, (C_out, C_out, 1), jnp.float32) * 0.1  # conv2 weight
    b2 = jax.random.normal(k_b2, (C_out,), jnp.float32) * 0.1           # conv2 bias
    gamma = 1.0 + 0.1 * jax.random.normal(k_g, (C_out,), jnp.float32)   # BN weight
    beta = 0.1 * jax.random.normal(k_b, (C_out,), jnp.float32)          # BN bias
    run_mean = 0.1 * jax.random.normal(k_m, (C_out,), jnp.float32)      # BN running_mean
    run_var = jnp.abs(jax.random.normal(k_v, (C_out,), jnp.float32)) + 0.5  # BN running_var

    # Fold (conv2 + BN) into conv1 ONCE; per-call path is matchbox_apply only.
    w_fold, b_fold = fold_matchbox_params(x_ncl=None, w1=w1, w2=w2, b2=b2,
                                          gamma=gamma, beta=beta,
                                          run_mean=run_mean, run_var=run_var) \
        if False else fold_matchbox_params(w1, w2, b2, gamma, beta, run_mean, run_var)
    w_fold = jax.block_until_ready(w_fold)

    out = matchbox_apply(x, w_fold, b_fold, c_out=C_out)
    out = jax.block_until_ready(out)

    ref = _reference(x, w1, w2, b2, gamma, beta, run_mean, run_var)
    assert out.shape == (N, C_out, L), out.shape
    # bf16 folded weights + bf16 LHS + bf16 output store -> bf16-level tolerance
    # against the f32 reference.
    assert jnp.allclose(out, ref, atol=2e-2, rtol=2e-2), \
        float(jnp.max(jnp.abs(out - ref)))

    print("KERNEL_OK")
</pallas_src>

<mosaic_0001>
module attributes {stable_mosaic.version = 11 : i64} {
  func.func @_matchbox_kernel(%arg0: i32, %arg1: memref<64x128xbf16, #tpu.memory_space<vmem>>, %arg2: memref<128x128xbf16, #tpu.memory_space<vmem>>, %arg3: memref<1x128xf32, #tpu.memory_space<vmem>>, %arg4: memref<64x128xbf16, #tpu.memory_space<vmem>>) attributes {dimension_semantics = [#tpu.dimension_semantics<parallel>], iteration_bounds = array<i64: 2>, scalar_prefetch = 0 : i64, scratch_operands = 0 : i64, tpu.core_type = #tpu.core_type<tc>, window_params = [{transform_indices = @transform_0, window_bounds = array<i64: 64, 128>}, {pipeline_mode = #tpu.pipeline_mode<synchronous>, transform_indices = @transform_1, window_bounds = array<i64: 128, 128>}, {pipeline_mode = #tpu.pipeline_mode<synchronous>, transform_indices = @transform_2, window_bounds = array<i64: 1, 128>}, {transform_indices = @transform_3, window_bounds = array<i64: 64, 128>}]} {
    %c0 = arith.constant 0 : index
    %c0_0 = arith.constant 0 : index
    %0 = vector.load %arg1[%c0, %c0_0] : memref<64x128xbf16, #tpu.memory_space<vmem>>, vector<64x128xbf16>
    %c0_1 = arith.constant 0 : index
    %c0_2 = arith.constant 0 : index
    %1 = vector.load %arg2[%c0_1, %c0_2] : memref<128x128xbf16, #tpu.memory_space<vmem>>, vector<128x128xbf16>
    %cst = arith.constant dense<0.000000e+00> : vector<64x128xf32>
    %2 = tpu.matmul %0, %1, %cst {dimension_numbers = #tpu.dot_dimension_numbers<[1], [0], [0], [1], [0, 0, 1, 1], [], []>} : vector<64x128xbf16>, vector<128x128xbf16>, vector<64x128xf32> -> vector<64x128xf32>
    %c0_3 = arith.constant 0 : index
    %c0_4 = arith.constant 0 : index
    %3 = vector.load %arg3[%c0_3, %c0_4] : memref<1x128xf32, #tpu.memory_space<vmem>>, vector<1x128xf32>
    %4 = vector.broadcast %3 : vector<1x128xf32> to vector<64x128xf32>
    %5 = arith.addf %2, %4 : vector<64x128xf32>
    %cst_5 = arith.constant 0.000000e+00 : f32
    %6 = vector.broadcast %cst_5 : f32 to vector<64x128xf32>
    %7 = arith.maximumf %5, %6 : vector<64x128xf32>
    %8 = arith.truncf %7 : vector<64x128xf32> to vector<64x128xbf16>
    %c0_6 = arith.constant 0 : index
    %c0_7 = arith.constant 0 : index
    %9 = vector.load %arg4[%c0_6, %c0_7] : memref<64x128xbf16, #tpu.memory_space<vmem>>, vector<64x128xbf16>
    tpu.vector_store %arg4[%c0_6, %c0_7], %8 {strides = array<i32>} : memref<64x128xbf16, #tpu.memory_space<vmem>>, vector<64x128xbf16>,
    return
  }
  func.func @transform_0(%arg0: i32) -> (i32, i32) {
    %c0_i32 = arith.constant 0 : i32
    %c0_i32_0 = arith.constant 0 : i32
    return %arg0, %c0_i32 : i32, i32
  }
  func.func @transform_1(%arg0: i32) -> (i32, i32) {
    %c0_i32 = arith.constant 0 : i32
    %c0_i32_0 = arith.constant 0 : i32
    %c0_i32_1 = arith.constant 0 : i32
    return %c0_i32, %c0_i32_0 : i32, i32
  }
  func.func @transform_2(%arg0: i32) -> (i32, i32) {
    %c0_i32 = arith.constant 0 : i32
    %c0_i32_0 = arith.constant 0 : i32
    %c0_i32_1 = arith.constant 0 : i32
    return %c0_i32, %c0_i32_0 : i32, i32
  }
  func.func @transform_3(%arg0: i32) -> (i32, i32) {
    %c0_i32 = arith.constant 0 : i32
    %c0_i32_0 = arith.constant 0 : i32
    return %arg0, %c0_i32 : i32, i32
  }
}

</mosaic_0001>

<bundles_post_ra>
// kernel: matchbox_apply.1
= control target key start
LH: loop header
LB: loop body
LE: loop exit
PB: predicated region body
PF: predicated region fallthrough
CT: control target
= control target key end

     0   :  { %s538_s12 = smov 0   ;;  %s589_s0 = inlined_call_operand.vmem [shape: bf16[128,128], index: 0, kind: input, shape index: {}]   ;;  %s590_s1 = inlined_call_operand.vmem [shape: bf16[128,128], index: 1, kind: input, shape index: {}]   ;;  %s591_s2 = inlined_call_operand.vmem [shape: f32[1,128], index: 2, kind: input, shape index: {}]   ;;  %s592_s3 = inlined_call_operand.vmem [shape: bf16[128,128], index: 3, kind: output, shape index: {}]  }
   0x1 LB: > { %s383_s13 = sadd.s32 4294967295, %s516_s12   ;;  %p387_p0 = scmp.ge.s32.totalorder %s516_s12, 1  ;;  %s516_s12 = sphi %s538_s12, %s13_s12  }
   0x2   : > { %p138_p1 = scmp.lt.s32.totalorder %s516_s12, 3 }
   0x4   : > { %p139_p2 = pnand %p387_p0, %p138_p1 }
   0x5   : > { %s388_s22 = sshll.u32 (!%p139_p2), %s383_s13, 3 }
   0x6   : > { %142 = sbr.rel (%p139_p2) target bundleno = 192 (0xc0), region = 32  ;;  %p163_p3 = scmp.lt.s32.totalorder (!%p139_p2), %s388_s22, 15 }
   0xb   : > { %v453_v0 = vld [vmem:[%s590_s1 + $0x38] sm:$0xff]  ;;  %v452_v1 = vld [vmem:[%s590_s1 + $0x30] sm:$0xff]  ;;  %v451_v2 = vld [vmem:[%s590_s1 + $0x28] sm:$0xff]  ;;  %s594_s22 = smov (!%p163_p3, %s388_s22), 15 }
   0xc   : > { %274 = vmatpush.bf16.msra.mxu0 %v453_v0  ;;  %477 = vmatpush.bf16.msra.mxu1 %v453_v0  ;;  %v450_v3 = vld [vmem:[%s590_s1 + $0x20] sm:$0xff]  ;;  %v449_v4 = vld [vmem:[%s590_s1 + $0x18] sm:$0xff]  ;;  %v448_v5 = vld [vmem:[%s590_s1 + $0x10] sm:$0xff]  ;;  %s389_s29 = sshll.u32 %s594_s22, 2 }
   0xd   : > { %478 = vmatpush.bf16.msra.mxu2 %v453_v0  ;;  %479 = vmatpush.bf16.msra.mxu3 %v453_v0  ;;  %v447_v6 = vld [vmem:[%s590_s1 + $0x8] sm:$0xff]  ;;  %v446_v7 = vld [vmem:[%s590_s1] sm:$0xff]  ;;  %s166_s7 = scalar_lea.vmem %s589_s0, %s389_s29  ;;  %s172_s13 = scalar_lea.vmem %s592_s3, %s389_s29 }
   0xe   : > { %v442_v8 = vld [vmem:[%s166_s7] sm:$0xff]  ;;  %v443_v9 = vld [vmem:[%s166_s7 + $0x8] sm:$0xff]  ;;  %v444_v10 = vld [vmem:[%s166_s7 + $0x10] sm:$0xff] }
   0xf   : > { %v445_v11 = vld [vmem:[%s166_s7 + $0x18] sm:$0xff]  ;;  %v509_v14 = vld [vmem:[%s591_s2] ss:$0 sm:$0xff] }
  0x10   : > { %275 = vmatpush.bf16.msra.mxu0 %v452_v1  ;;  %480 = vmatpush.bf16.msra.mxu1 %v452_v1 }
  0x11   : > { %481 = vmatpush.bf16.msra.mxu2 %v452_v1  ;;  %482 = vmatpush.bf16.msra.mxu3 %v452_v1 }
  0x14   : > { %276 = vmatpush.bf16.msra.mxu0 %v451_v2  ;;  %483 = vmatpush.bf16.msra.mxu1 %v451_v2 }
  0x15   : > { %484 = vmatpush.bf16.msra.mxu2 %v451_v2  ;;  %485 = vmatpush.bf16.msra.mxu3 %v451_v2 }
  0x18   : > { %277 = vmatpush.bf16.msra.mxu0 %v450_v3  ;;  %486 = vmatpush.bf16.msra.mxu1 %v450_v3 }
  0x19   : > { %487 = vmatpush.bf16.msra.mxu2 %v450_v3  ;;  %488 = vmatpush.bf16.msra.mxu3 %v450_v3 }
  0x1c   : > { %278 = vmatpush.bf16.msra.mxu0 %v449_v4  ;;  %489 = vmatpush.bf16.msra.mxu1 %v449_v4 }
  0x1d   : > { %490 = vmatpush.bf16.msra.mxu2 %v449_v4  ;;  %491 = vmatpush.bf16.msra.mxu3 %v449_v4 }
  0x20   : > { %279 = vmatpush.bf16.msra.mxu0 %v448_v5  ;;  %492 = vmatpush.bf16.msra.mxu1 %v448_v5 }
  0x21   : > { %493 = vmatpush.bf16.msra.mxu2 %v448_v5  ;;  %494 = vmatpush.bf16.msra.mxu3 %v448_v5 }
  0x24   : > { %280 = vmatpush.bf16.msra.mxu0 %v447_v6  ;;  %495 = vmatpush.bf16.msra.mxu1 %v447_v6 }
  0x25   : > { %496 = vmatpush.bf16.msra.mxu2 %v447_v6  ;;  %497 = vmatpush.bf16.msra.mxu3 %v447_v6 }
  0x28   : > { %281 = vmatpush.bf16.msra.mxu0 %v446_v7  ;;  %498 = vmatpush.bf16.msra.mxu1 %v446_v7 }
  0x29   : > { %499 = vmatpush.bf16.msra.mxu2 %v446_v7  ;;  %500 = vmatpush.bf16.msra.mxu3 %v446_v7 }
  0x2b   : > { %282 = vmatmul.bf16.vlgmr.msra.gmra.mxu0 %v442_v8  ;;  %287 = vmatmul.bf16.vlgmr.msra.gmra.mxu1 %v443_v9 }
  0x2c   : > { %292 = vmatmul.bf16.vlgmr.msra.gmra.mxu2 %v444_v10  ;;  %297 = vmatmul.bf16.vlgmr.msra.gmra.mxu3 %v445_v11 }
  0xa8   : > { %v283_v12 = vpop.f32.mrf.mxu0  ;;  %v288_v13 = vpop.f32.mrf.mxu1 }
  0xa9   : > { %v284_v15 = vadd.f32 %v509_v14, %v283_v12  ;;  %v289_v16 = vadd.f32 %v509_v14, %v288_v13 }
  0xab   : > { %v303_v23 = vmax.f32 %v284_v15, 0.0  ;;  %v305_v24 = vmax.f32 %v289_v16, 0.0 }
  0xaf   : > { %v293_v17 = vpop.f32.mrf.mxu2  ;;  %v298_v18 = vpop.f32.mrf.mxu3 }
  0xb0   : > { %v285_v19 = vpop.f32.mrf.mxu0  ;;  %v290_v20 = vpop.f32.mrf.mxu1  ;;  %v294_v29 = vadd.f32 %v509_v14, %v293_v17  ;;  %v299_v30 = vadd.f32 %v509_v14, %v298_v18 }
  0xb1   : > { %v286_v21 = vadd.f32 %v509_v14, %v285_v19  ;;  %v291_v22 = vadd.f32 %v509_v14, %v290_v20 }
  0xb2   : > { %v307_v35 = vmax.f32 %v294_v29, 0.0  ;;  %v309_v36 = vmax.f32 %v299_v30, 0.0 }
  0xb3   : > { %v304_v25 = vmax.f32 %v286_v21, 0.0  ;;  %v306_v26 = vmax.f32 %v291_v22, 0.0 }
  0xb5   : > { %v457_v27 = vpack.c.bf16 %v304_v25, %v303_v23  ;;  %v462_v28 = vpack.c.bf16 %v306_v26, %v305_v24 }
  0xb7   : > { %458 = vst [vmem:[%s172_s13] sm:$0xff] %v457_v27   ;;  %v295_v31 = vpop.f32.mrf.mxu2  ;;  %v300_v32 = vpop.f32.mrf.mxu3 }
  0xb8   : > { %474 = vst [vmem:[%s172_s13 + $0x8] sm:$0xff] %v462_v28   ;;  %v296_v33 = vadd.f32 %v509_v14, %v295_v31  ;;  %v301_v34 = vadd.f32 %v509_v14, %v300_v32 }
  0xba   : > { %v308_v37 = vmax.f32 %v296_v33, 0.0  ;;  %v310_v38 = vmax.f32 %v301_v34, 0.0 }
  0xbc   : > { %v467_v39 = vpack.c.bf16 %v308_v37, %v307_v35  ;;  %v472_v40 = vpack.c.bf16 %v310_v38, %v309_v36 }
  0xbe   : > { %475 = vst [vmem:[%s172_s13 + $0x10] sm:$0xff] %v467_v39  }
  0xbf   : > { %476 = vst [vmem:[%s172_s13 + $0x18] sm:$0xff] %v472_v40  }
  0xc0 PF: > { %s13_s12 = sadd.s32 1, %s516_s12  }
  0xc1   : > { %p10_p4 = scmp.ge.s32.totalorder %s13_s12, 4  }
  0xc3   :  { %12 = sbr.rel (!%p10_p4) target bundleno = 1 (0x1), region = 62 }

</bundles_post_ra>
